<compile_context>
chip_gen: v7x
topology: tpu7x:2x2x1
jax: 0.10.0
libtpu: 0.0.40
codegen_flags: <defaults>
</compile_context>

<pallas_src>
import jax
import jax.numpy as jnp
from jax.experimental import pallas as pl
from jax.experimental.pallas import tpu as pltpu

BN_EPS = 1e-5
LANE = 128


# --------------------------------------------------------------------------- #
# Kernel
# --------------------------------------------------------------------------- #
def _bn_relu(h, gamma_ref, beta_ref):
    """Training-mode BatchNorm1d (batch mean, biased batch var, eps=1e-5) + ReLU.

    gamma is folded into the rsqrt scale; (h - mean) is computed once and
    reused for both the variance and the normalization.  All math in f32.
    """
    mean = jnp.mean(h, axis=0, keepdims=True)
    hc = h - mean
    var = jnp.mean(hc * hc, axis=0, keepdims=True)
    scale = gamma_ref[...] * jax.lax.rsqrt(var + BN_EPS)
    return jnp.maximum(hc * scale + beta_ref[...], 0.0)


def simple_dense_net_kernel(
    x_ref,
    w1_ref, g1_ref, be1_ref,
    w2_ref, g2_ref, be2_ref,
    w3_ref, g3_ref, be3_ref,
    w4_ref, b4_ref,
    o_ref,
):
    # Weights arrive as bf16; activations are cast to bf16 only at the dot
    # operands (no extra bf16 elementwise work -> cheap on v5e too).
    # Accumulation and all BN math stay f32 via preferred_element_type.
    x = x_ref[...].astype(jnp.bfloat16)
    h = _bn_relu(
        jnp.dot(x, w1_ref[...], preferred_element_type=jnp.float32),
        g1_ref, be1_ref)
    h = _bn_relu(
        jnp.dot(h.astype(jnp.bfloat16), w2_ref[...], preferred_element_type=jnp.float32),
        g2_ref, be2_ref)
    h = _bn_relu(
        jnp.dot(h.astype(jnp.bfloat16), w3_ref[...], preferred_element_type=jnp.float32),
        g3_ref, be3_ref)
    # Final layer on zero-padded (lin3, 128) bf16 weights -> lane-dense (B, 128)
    # unmasked store; the wrapper slices back to the true 10 logits.
    o_ref[...] = (
        jnp.dot(h.astype(jnp.bfloat16), w4_ref[...], preferred_element_type=jnp.float32)
        + b4_ref[...]
    ).astype(o_ref.dtype)


# --------------------------------------------------------------------------- #
# Parameter prep (one-time) + forward wrapper
# --------------------------------------------------------------------------- #
def prepare_params(params):
    """One-time prep: lane-pad the final layer (10 -> 128) and cast weights to
    bf16.  Call once and reuse the result for every forward call."""
    lin3, out_size = params["w4"].shape
    out_pad = max(LANE, pl.cdiv(out_size, LANE) * LANE)

    w4p = (jnp.zeros((lin3, out_pad), jnp.float32)
           .at[:, :out_size].set(params["w4"]))
    b4p = (jnp.zeros((1, out_pad), jnp.float32)
           .at[:, :out_size].set(params["b4"]))

    return dict(
        w1=params["w1"].astype(jnp.bfloat16),
        g1=params["g1"], be1=params["be1"],
        w2=params["w2"].astype(jnp.bfloat16),
        g2=params["g2"], be2=params["be2"],
        w3=params["w3"].astype(jnp.bfloat16),
        g3=params["g3"], be3=params["be3"],
        w4=w4p.astype(jnp.bfloat16),
        b4=b4p,
        out_size=out_size,
        out_pad=out_pad,
    )


def _vmem_cap_bytes():
    """Generation-aware VMEM cap: 75% of physical per-core VMEM, conservative
    48 MiB fallback (safe on v7x's 64 MiB) when the query is unavailable."""
    try:
        phys = int(pltpu.get_tpu_info().vmem_capacity_bytes)
        return max(phys * 3 // 4, 16 << 20)
    except Exception:
        return 48 << 20


def simple_dense_net_forward(x, prepared):
    """Forward pass. x is (B, input_size) or (B, C, H, W).  `prepared` is the
    output of prepare_params (cached bf16 / lane-padded weights)."""
    if x.ndim == 4:
        x = x.reshape(x.shape[0], -1)
    elif x.ndim != 2:
        raise ValueError(f"Expected 2D or 4D input tensor, got {x.ndim}D")

    batch, in_size = x.shape
    lin1 = prepared["w1"].shape[1]
    lin2 = prepared["w2"].shape[1]
    lin3 = prepared["w3"].shape[1]
    out_size = prepared["out_size"]
    out_pad = prepared["out_pad"]

    args = (
        x,
        prepared["w1"], prepared["g1"], prepared["be1"],
        prepared["w2"], prepared["g2"], prepared["be2"],
        prepared["w3"], prepared["g3"], prepared["be3"],
        prepared["w4"], prepared["b4"],
    )

    # Advisory cost estimate for the XLA scheduler.
    flops = 2 * batch * (in_size * lin1 + lin1 * lin2 + lin2 * lin3 + lin3 * out_pad)
    io_bytes = (4 * batch * in_size                      # x (f32)
                + sum(int(a.size) * a.dtype.itemsize for a in args[1:])
                + 4 * batch * out_pad)                   # output (f32)
    cost = pl.CostEstimate(
        flops=flops,
        transcendentals=lin1 + lin2 + lin3,  # one rsqrt per BN feature
        bytes_accessed=io_bytes,
    )

    # Right-size the VMEM request: I/O + live f32 activations (+ bf16 copies),
    # with 2x headroom for compiler scratch, clamped to the per-chip cap.
    act_bytes = 6 * batch * (lin1 + lin2 + lin3 + out_pad)
    vmem_limit = int(min(max(2 * (io_bytes + act_bytes), 4 << 20), _vmem_cap_bytes()))

    vmem_spec = pl.BlockSpec(memory_space=pltpu.MemorySpace.VMEM)
    out_padded = pl.pallas_call(
        simple_dense_net_kernel,
        out_shape=jax.ShapeDtypeStruct((batch, out_pad), jnp.float32),
        in_specs=[vmem_spec] * len(args),
        out_specs=vmem_spec,
        compiler_params=pltpu.CompilerParams(vmem_limit_bytes=vmem_limit),
        cost_estimate=cost,
    )(*args)

    return out_padded[:, :out_size]


# --------------------------------------------------------------------------- #
# Init + references
# --------------------------------------------------------------------------- #
def init_params(key, input_size=784, lin1=256, lin2=256, lin3=256, out=10):
    """PyTorch-Linear-style uniform init (weights stored (in, out), f32)."""
    def lin_init(k, fan_in, fan_out):
        kw, kb = jax.random.split(k)
        bound = 1.0 / jnp.sqrt(fan_in)
        w = jax.random.uniform(kw, (fan_in, fan_out), jnp.float32, -bound, bound)
        b = jax.random.uniform(kb, (1, fan_out), jnp.float32, -bound, bound)
        return w, b

    k1, k2, k3, k4 = jax.random.split(key, 4)
    w1, b1 = lin_init(k1, input_size, lin1)
    w2, b2 = lin_init(k2, lin1, lin2)
    w3, b3 = lin_init(k3, lin2, lin3)
    w4, b4 = lin_init(k4, lin3, out)

    # b1..b3 are kept for module fidelity but are mathematically cancelled by
    # the following training-mode BatchNorm, so the kernel never reads them.
    return dict(
        w1=w1, b1=b1, g1=jnp.ones((1, lin1), jnp.float32), be1=jnp.zeros((1, lin1), jnp.float32),
        w2=w2, b2=b2, g2=jnp.ones((1, lin2), jnp.float32), be2=jnp.zeros((1, lin2), jnp.float32),
        w3=w3, b3=b3, g3=jnp.ones((1, lin3), jnp.float32), be3=jnp.zeros((1, lin3), jnp.float32),
        w4=w4, b4=b4,
    )


def reference_forward(x, params, matmul_dtype=jnp.float32):
    """Pure-JAX reference with the exact PyTorch forward (biases included).
    matmul_dtype=bf16 mirrors the kernel's MXU operand precision."""
    if x.ndim == 4:
        x = x.reshape(x.shape[0], -1)
    h = x
    for i in (1, 2, 3):
        h = jnp.dot(h.astype(matmul_dtype), params[f"w{i}"].astype(matmul_dtype),
                    preferred_element_type=jnp.float32) + params[f"b{i}"]
        mean = jnp.mean(h, axis=0, keepdims=True)
        var = jnp.mean((h - mean) ** 2, axis=0, keepdims=True)
        h = (h - mean) / jnp.sqrt(var + BN_EPS)
        h = h * params[f"g{i}"] + params[f"be{i}"]
        h = jnp.maximum(h, 0.0)
    return jnp.dot(h.astype(matmul_dtype), params["w4"].astype(matmul_dtype),
                   preferred_element_type=jnp.float32) + params["b4"]


if __name__ == "__main__":
    key = jax.random.PRNGKey(0)
    kx, kp = jax.random.split(key)

    # Small 4D NCHW input consistent with input_size=784: (8, 1, 28, 28).
    x = jax.random.normal(kx, (8, 1, 28, 28), dtype=jnp.float32)
    params = init_params(kp, input_size=784, lin1=256, lin2=256, lin3=256, out=10)
    prepared = prepare_params(params)   # one-time: lane-pad + bf16 cast

    out = simple_dense_net_forward(x, prepared)
    out = jax.block_until_ready(out)
    assert out.shape == (8, 10), out.shape

    # Tight check vs. a reference that mirrors the kernel's bf16-operand /
    # f32-accumulate matmuls (catches logic bugs).
    ref_mixed = reference_forward(x, params, matmul_dtype=jnp.bfloat16)
    err_mixed = float(jnp.max(jnp.abs(out - ref_mixed)))
    assert jnp.allclose(out, ref_mixed, atol=1e-2, rtol=1e-2), err_mixed

    # Looser check vs. the full-f32 PyTorch-exact reference (bf16 MXU operands
    # trade a small amount of precision for throughput).
    ref_f32 = reference_forward(x, params, matmul_dtype=jnp.float32)
    err_f32 = float(jnp.max(jnp.abs(out - ref_f32)))
    assert jnp.allclose(out, ref_f32, atol=1e-1, rtol=1e-1), err_f32

    print("KERNEL_OK")
</pallas_src>

<mosaic_0001>
module attributes {stable_mosaic.version = 11 : i64} {
  func.func @simple_dense_net_kernel(%arg0: memref<8x784xf32, #tpu.memory_space<vmem>>, %arg1: memref<784x256xbf16, #tpu.memory_space<vmem>>, %arg2: memref<1x256xf32, #tpu.memory_space<vmem>>, %arg3: memref<1x256xf32, #tpu.memory_space<vmem>>, %arg4: memref<256x256xbf16, #tpu.memory_space<vmem>>, %arg5: memref<1x256xf32, #tpu.memory_space<vmem>>, %arg6: memref<1x256xf32, #tpu.memory_space<vmem>>, %arg7: memref<256x256xbf16, #tpu.memory_space<vmem>>, %arg8: memref<1x256xf32, #tpu.memory_space<vmem>>, %arg9: memref<1x256xf32, #tpu.memory_space<vmem>>, %arg10: memref<256x128xbf16, #tpu.memory_space<vmem>>, %arg11: memref<1x128xf32, #tpu.memory_space<vmem>>, %arg12: memref<8x128xf32, #tpu.memory_space<vmem>>) attributes {dimension_semantics = [], scalar_prefetch = 0 : i64, scratch_operands = 0 : i64, tpu.core_type = #tpu.core_type<tc>} {
    %c0 = arith.constant 0 : index
    %c0_0 = arith.constant 0 : index
    %0 = vector.load %arg0[%c0, %c0_0] : memref<8x784xf32, #tpu.memory_space<vmem>>, vector<8x784xf32>
    %1 = arith.truncf %0 : vector<8x784xf32> to vector<8x784xbf16>
    %c0_1 = arith.constant 0 : index
    %c0_2 = arith.constant 0 : index
    %2 = vector.load %arg1[%c0_1, %c0_2] : memref<784x256xbf16, #tpu.memory_space<vmem>>, vector<784x256xbf16>
    %cst = arith.constant dense<0.000000e+00> : vector<8x256xf32>
    %3 = tpu.matmul %1, %2, %cst {dimension_numbers = #tpu.dot_dimension_numbers<[1], [0], [0], [1], [0, 0, 1, 1], [], []>} : vector<8x784xbf16>, vector<784x256xbf16>, vector<8x256xf32> -> vector<8x256xf32>
    %cst_3 = arith.constant dense<0.000000e+00> : vector<256xf32>
    %4 = vector.multi_reduction <add>, %3, %cst_3 [0] : vector<8x256xf32> to vector<256xf32>
    %5 = vector.shape_cast %4 : vector<256xf32> to vector<1x256xf32>
    %cst_4 = arith.constant 8.000000e+00 : f32
    %6 = vector.broadcast %cst_4 : f32 to vector<1x256xf32>
    %7 = arith.divf %5, %6 : vector<1x256xf32>
    %8 = vector.broadcast %7 : vector<1x256xf32> to vector<8x256xf32>
    %9 = arith.subf %3, %8 : vector<8x256xf32>
    %10 = arith.mulf %9, %9 : vector<8x256xf32>
    %cst_5 = arith.constant dense<0.000000e+00> : vector<256xf32>
    %11 = vector.multi_reduction <add>, %10, %cst_5 [0] : vector<8x256xf32> to vector<256xf32>
    %12 = vector.shape_cast %11 : vector<256xf32> to vector<1x256xf32>
    %cst_6 = arith.constant 8.000000e+00 : f32
    %13 = vector.broadcast %cst_6 : f32 to vector<1x256xf32>
    %14 = arith.divf %12, %13 : vector<1x256xf32>
    %c0_7 = arith.constant 0 : index
    %c0_8 = arith.constant 0 : index
    %15 = vector.load %arg2[%c0_7, %c0_8] : memref<1x256xf32, #tpu.memory_space<vmem>>, vector<1x256xf32>
    %cst_9 = arith.constant 9.99999974E-6 : f32
    %16 = vector.broadcast %cst_9 : f32 to vector<1x256xf32>
    %17 = arith.addf %14, %16 : vector<1x256xf32>
    %18 = math.rsqrt %17 : vector<1x256xf32>
    %19 = arith.mulf %15, %18 : vector<1x256xf32>
    %20 = vector.broadcast %19 : vector<1x256xf32> to vector<8x256xf32>
    %21 = arith.mulf %9, %20 : vector<8x256xf32>
    %c0_10 = arith.constant 0 : index
    %c0_11 = arith.constant 0 : index
    %22 = vector.load %arg3[%c0_10, %c0_11] : memref<1x256xf32, #tpu.memory_space<vmem>>, vector<1x256xf32>
    %23 = vector.broadcast %22 : vector<1x256xf32> to vector<8x256xf32>
    %24 = arith.addf %21, %23 : vector<8x256xf32>
    %cst_12 = arith.constant 0.000000e+00 : f32
    %25 = vector.broadcast %cst_12 : f32 to vector<8x256xf32>
    %26 = arith.maximumf %24, %25 : vector<8x256xf32>
    %27 = arith.truncf %26 : vector<8x256xf32> to vector<8x256xbf16>
    %c0_13 = arith.constant 0 : index
    %c0_14 = arith.constant 0 : index
    %28 = vector.load %arg4[%c0_13, %c0_14] : memref<256x256xbf16, #tpu.memory_space<vmem>>, vector<256x256xbf16>
    %cst_15 = arith.constant dense<0.000000e+00> : vector<8x256xf32>
    %29 = tpu.matmul %27, %28, %cst_15 {dimension_numbers = #tpu.dot_dimension_numbers<[1], [0], [0], [1], [0, 0, 1, 1], [], []>} : vector<8x256xbf16>, vector<256x256xbf16>, vector<8x256xf32> -> vector<8x256xf32>
    %cst_16 = arith.constant dense<0.000000e+00> : vector<256xf32>
    %30 = vector.multi_reduction <add>, %29, %cst_16 [0] : vector<8x256xf32> to vector<256xf32>
    %31 = vector.shape_cast %30 : vector<256xf32> to vector<1x256xf32>
    %cst_17 = arith.constant 8.000000e+00 : f32
    %32 = vector.broadcast %cst_17 : f32 to vector<1x256xf32>
    %33 = arith.divf %31, %32 : vector<1x256xf32>
    %34 = vector.broadcast %33 : vector<1x256xf32> to vector<8x256xf32>
    %35 = arith.subf %29, %34 : vector<8x256xf32>
    %36 = arith.mulf %35, %35 : vector<8x256xf32>
    %cst_18 = arith.constant dense<0.000000e+00> : vector<256xf32>
    %37 = vector.multi_reduction <add>, %36, %cst_18 [0] : vector<8x256xf32> to vector<256xf32>
    %38 = vector.shape_cast %37 : vector<256xf32> to vector<1x256xf32>
    %cst_19 = arith.constant 8.000000e+00 : f32
    %39 = vector.broadcast %cst_19 : f32 to vector<1x256xf32>
    %40 = arith.divf %38, %39 : vector<1x256xf32>
    %c0_20 = arith.constant 0 : index
    %c0_21 = arith.constant 0 : index
    %41 = vector.load %arg5[%c0_20, %c0_21] : memref<1x256xf32, #tpu.memory_space<vmem>>, vector<1x256xf32>
    %cst_22 = arith.constant 9.99999974E-6 : f32
    %42 = vector.broadcast %cst_22 : f32 to vector<1x256xf32>
    %43 = arith.addf %40, %42 : vector<1x256xf32>
    %44 = math.rsqrt %43 : vector<1x256xf32>
    %45 = arith.mulf %41, %44 : vector<1x256xf32>
    %46 = vector.broadcast %45 : vector<1x256xf32> to vector<8x256xf32>
    %47 = arith.mulf %35, %46 : vector<8x256xf32>
    %c0_23 = arith.constant 0 : index
    %c0_24 = arith.constant 0 : index
    %48 = vector.load %arg6[%c0_23, %c0_24] : memref<1x256xf32, #tpu.memory_space<vmem>>, vector<1x256xf32>
    %49 = vector.broadcast %48 : vector<1x256xf32> to vector<8x256xf32>
    %50 = arith.addf %47, %49 : vector<8x256xf32>
    %cst_25 = arith.constant 0.000000e+00 : f32
    %51 = vector.broadcast %cst_25 : f32 to vector<8x256xf32>
    %52 = arith.maximumf %50, %51 : vector<8x256xf32>
    %53 = arith.truncf %52 : vector<8x256xf32> to vector<8x256xbf16>
    %c0_26 = arith.constant 0 : index
    %c0_27 = arith.constant 0 : index
    %54 = vector.load %arg7[%c0_26, %c0_27] : memref<256x256xbf16, #tpu.memory_space<vmem>>, vector<256x256xbf16>
    %cst_28 = arith.constant dense<0.000000e+00> : vector<8x256xf32>
    %55 = tpu.matmul %53, %54, %cst_28 {dimension_numbers = #tpu.dot_dimension_numbers<[1], [0], [0], [1], [0, 0, 1, 1], [], []>} : vector<8x256xbf16>, vector<256x256xbf16>, vector<8x256xf32> -> vector<8x256xf32>
    %cst_29 = arith.constant dense<0.000000e+00> : vector<256xf32>
    %56 = vector.multi_reduction <add>, %55, %cst_29 [0] : vector<8x256xf32> to vector<256xf32>
    %57 = vector.shape_cast %56 : vector<256xf32> to vector<1x256xf32>
    %cst_30 = arith.constant 8.000000e+00 : f32
    %58 = vector.broadcast %cst_30 : f32 to vector<1x256xf32>
    %59 = arith.divf %57, %58 : vector<1x256xf32>
    %60 = vector.broadcast %59 : vector<1x256xf32> to vector<8x256xf32>
    %61 = arith.subf %55, %60 : vector<8x256xf32>
    %62 = arith.mulf %61, %61 : vector<8x256xf32>
    %cst_31 = arith.constant dense<0.000000e+00> : vector<256xf32>
    %63 = vector.multi_reduction <add>, %62, %cst_31 [0] : vector<8x256xf32> to vector<256xf32>
    %64 = vector.shape_cast %63 : vector<256xf32> to vector<1x256xf32>
    %cst_32 = arith.constant 8.000000e+00 : f32
    %65 = vector.broadcast %cst_32 : f32 to vector<1x256xf32>
    %66 = arith.divf %64, %65 : vector<1x256xf32>
    %c0_33 = arith.constant 0 : index
    %c0_34 = arith.constant 0 : index
    %67 = vector.load %arg8[%c0_33, %c0_34] : memref<1x256xf32, #tpu.memory_space<vmem>>, vector<1x256xf32>
    %cst_35 = arith.constant 9.99999974E-6 : f32
    %68 = vector.broadcast %cst_35 : f32 to vector<1x256xf32>
    %69 = arith.addf %66, %68 : vector<1x256xf32>
    %70 = math.rsqrt %69 : vector<1x256xf32>
    %71 = arith.mulf %67, %70 : vector<1x256xf32>
    %72 = vector.broadcast %71 : vector<1x256xf32> to vector<8x256xf32>
    %73 = arith.mulf %61, %72 : vector<8x256xf32>
    %c0_36 = arith.constant 0 : index
    %c0_37 = arith.constant 0 : index
    %74 = vector.load %arg9[%c0_36, %c0_37] : memref<1x256xf32, #tpu.memory_space<vmem>>, vector<1x256xf32>
    %75 = vector.broadcast %74 : vector<1x256xf32> to vector<8x256xf32>
    %76 = arith.addf %73, %75 : vector<8x256xf32>
    %cst_38 = arith.constant 0.000000e+00 : f32
    %77 = vector.broadcast %cst_38 : f32 to vector<8x256xf32>
    %78 = arith.maximumf %76, %77 : vector<8x256xf32>
    %79 = arith.truncf %78 : vector<8x256xf32> to vector<8x256xbf16>
    %c0_39 = arith.constant 0 : index
    %c0_40 = arith.constant 0 : index
    %80 = vector.load %arg10[%c0_39, %c0_40] : memref<256x128xbf16, #tpu.memory_space<vmem>>, vector<256x128xbf16>
    %cst_41 = arith.constant dense<0.000000e+00> : vector<8x128xf32>
    %81 = tpu.matmul %79, %80, %cst_41 {dimension_numbers = #tpu.dot_dimension_numbers<[1], [0], [0], [1], [0, 0, 1, 1], [], []>} : vector<8x256xbf16>, vector<256x128xbf16>, vector<8x128xf32> -> vector<8x128xf32>
    %c0_42 = arith.constant 0 : index
    %c0_43 = arith.constant 0 : index
    %82 = vector.load %arg11[%c0_42, %c0_43] : memref<1x128xf32, #tpu.memory_space<vmem>>, vector<1x128xf32>
    %83 = vector.broadcast %82 : vector<1x128xf32> to vector<8x128xf32>
    %84 = arith.addf %81, %83 : vector<8x128xf32>
    %c0_44 = arith.constant 0 : index
    %c0_45 = arith.constant 0 : index
    %85 = vector.load %arg12[%c0_44, %c0_45] : memref<8x128xf32, #tpu.memory_space<vmem>>, vector<8x128xf32>
    tpu.vector_store %arg12[%c0_44, %c0_45], %84 {strides = array<i32>} : memref<8x128xf32, #tpu.memory_space<vmem>>, vector<8x128xf32>,
    return
  }
}

</mosaic_0001>

<bundles_post_ra>
// kernel: tpu_custom_call.1
= control target key start
LH: loop header
LB: loop body
LE: loop exit
PB: predicated region body
PF: predicated region fallthrough
CT: control target
= control target key end

     0   :  { %17 = vsyncpa [#allocation3], 0  ;;  %s2644_s0 = inlined_call_operand.hbm [shape: f32[8,784], index: 0, kind: input, shape index: {}]   ;;  %s2645_s1 = inlined_call_operand.hbm [shape: bf16[784,256], index: 1, kind: input, shape index: {}]   ;;  %s2646_s2 = inlined_call_operand.vmem [shape: f32[1,256], index: 2, kind: input, shape index: {}]   ;;  %s2647_s3 = inlined_call_operand.vmem [shape: f32[1,256], index: 3, kind: input, shape index: {}]   ;;  %s2648_s4 = inlined_call_operand.hbm [shape: bf16[256,256], index: 4, kind: input, shape index: {}]   ;;  %s2649_s5 = inlined_call_operand.vmem [shape: f32[1,256], index: 5, kind: input, shape index: {}]   ;;  %s2650_s6 = inlined_call_operand.vmem [shape: f32[1,256], index: 6, kind: input, shape index: {}]   ;;  %s2651_s7 = inlined_call_operand.hbm [shape: bf16[256,256], index: 7, kind: input, shape index: {}]   ;;  %s2652_s8 = inlined_call_operand.vmem [shape: f32[1,256], index: 8, kind: input, shape index: {}]   ;;  %s2653_s9 = inlined_call_operand.vmem [shape: f32[1,256], index: 9, kind: input, shape index: {}]   ;;  %s2654_s10 = inlined_call_operand.hbm [shape: bf16[256,128], index: 10, kind: input, shape index: {}]   ;;  %s2655_s11 = inlined_call_operand.vmem [shape: f32[1,128], index: 11, kind: input, shape index: {}]   ;;  %s2656_s12 = inlined_call_operand.hbm [shape: f32[8,128], index: 12, kind: output, shape index: {}]  }
   0x1   :  { %18 = vsyncpa [#allocation6], 0 }
   0x2   :  { %19 = vsyncpa [#allocation9], 0 }
   0x3   :  { %20 = vsyncpa [#allocation4], 0  ;;  %s2435_s21 = smov [#allocation5]   ;;  %s2295_s25 = scalar_lea.hbm %s2645_s1, 12544 }
   0x4   :  { %s36_s22 = sshll.u32 %s2435_s21, 4  ;;  %p2296_p0 = scmp.ne.s32.totalorder %s2645_s1, %s2295_s25  ;;  %s37_s22 = int_to_ptr.vmem [resolvable:$true] %s36_s22 }
   0x5   :  { %p2299_p1 = scmp.lt.u32.totalorder %s2295_s25, %s2645_s1 }
   0x7   :  { %p2301_p2 = pnand %p2299_p1, %p2296_p0 }
   0x9   :  { %2304 = shalt.err (!%p2301_p2)
}
   0xa   :  { %s2305_s30 = scalar_lea.vmem %s37_s22, 12544  ;;  %p2310_p4 = scmp.lt.s32.totalorder %s37_s22, %s37_s22 }
   0xb   :  { %p2306_p3 = scmp.ne.s32.totalorder %s37_s22, %s2305_s30  ;;  %p2311_p5 = scmp.lt.s32.totalorder %s2305_s30, %s2305_s30 }
   0xd   :  { %p2312_p6 = por %p2311_p5, %p2310_p4 }
   0xf   :  { %p2313_p7 = pnand %p2312_p6, %p2306_p3 }
  0x11   :  { %2316 = shalt.err (!%p2313_p7)
}
  0x12   :  { %s2436_s13 = smov 128   ;;  %s2437_s14 = smov 8  }
  0x13   :  { %42 = dma.hbm_to_vmem [thread:$0]  %s2645_s1, 12544, %s37_s22, [#allocation6], %s2436_s13, %s2436_s13, %s2437_s14  }
  0x14   :  { %s2438_s17 = smov [#allocation8]   ;;  %s2439_s19 = smov [#allocation2]  }
  0x15   :  { %s68_s18 = sshll.u32 %s2438_s17, 4  ;;  %s27_s20 = sshll.u32 %s2439_s19, 4  ;;  %s69_s18 = int_to_ptr.vmem [resolvable:$true] %s68_s18  ;;  %s28_s20 = int_to_ptr.vmem [resolvable:$true] %s27_s20 }
  0x16   :  { %s2317_s24 = scalar_lea.hbm %s2651_s7, 4096 }
  0x17   :  { %p2318_p8 = scmp.ne.s32.totalorder %s2651_s7, %s2317_s24  ;;  %p2321_p9 = scmp.lt.u32.totalorder %s2317_s24, %s2651_s7 }
  0x19   :  { %p2323_p10 = pnand %p2321_p9, %p2318_p8 }
  0x1b   :  { %2326 = shalt.err (!%p2323_p10)
}
  0x1c   :  { %s2327_s1 = scalar_lea.vmem %s69_s18, 4096  ;;  %p2332_p12 = scmp.lt.s32.totalorder %s69_s18, %s69_s18 }
  0x1d   :  { %p2328_p11 = scmp.ne.s32.totalorder %s69_s18, %s2327_s1  ;;  %p2333_p13 = scmp.lt.s32.totalorder %s2327_s1, %s2327_s1 }
  0x1f   :  { %p2334_p0 = por %p2333_p13, %p2332_p12 }
  0x21   :  { %p2335_p1 = pnand %p2334_p0, %p2328_p11 }
  0x23   :  { %2338 = shalt.err (!%p2335_p1)
}
  0x24   :  { %74 = dma.hbm_to_vmem [thread:$0]  %s2651_s7, 4096, %s69_s18, [#allocation9], %s2436_s13, %s2436_s13, %s2437_s14  }
  0x25   :  { %s2339_s16 = scalar_lea.hbm %s2644_s0, 896 }
  0x26   :  { %p2340_p2 = scmp.ne.s32.totalorder %s2644_s0, %s2339_s16  ;;  %p2343_p3 = scmp.lt.u32.totalorder %s2339_s16, %s2644_s0 }
  0x28   :  { %p2345_p4 = pnand %p2343_p3, %p2340_p2 }
  0x2a   :  { %2348 = shalt.err (!%p2345_p4)
}
  0x2b   :  { %s2349_s24 = scalar_lea.vmem %s28_s20, 896  ;;  %p2354_p6 = scmp.lt.s32.totalorder %s28_s20, %s28_s20 }
  0x2c   :  { %p2350_p5 = scmp.ne.s32.totalorder %s28_s20, %s2349_s24  ;;  %p2355_p7 = scmp.lt.s32.totalorder %s2349_s24, %s2349_s24 }
  0x2e   :  { %p2356_p8 = por %p2355_p7, %p2354_p6 }
  0x30   :  { %p2357_p9 = pnand %p2356_p8, %p2350_p5 }
  0x32   :  { %2360 = shalt.err (!%p2357_p9)
}
  0x33   :  { %30 = dma.hbm_to_vmem [thread:$0]  %s2644_s0, 896, %s28_s20, [#allocation3]  }
  0x34   :  { %s2440_s25 = smov [#allocation7]   ;;  %s2441_s27 = smov [#allocation10]  }
  0x35   :  { %s52_s26 = sshll.u32 %s2440_s25, 4  ;;  %s84_s28 = sshll.u32 %s2441_s27, 4  ;;  %s53_s26 = int_to_ptr.vmem [resolvable:$true] %s52_s26  ;;  %s85_s28 = int_to_ptr.vmem [resolvable:$true] %s84_s28 }
  0x36   :  { %s2361_s29 = scalar_lea.hbm %s2648_s4, 4096 }
  0x37   :  { %p2362_p10 = scmp.ne.s32.totalorder %s2648_s4, %s2361_s29  ;;  %p2365_p11 = scmp.lt.u32.totalorder %s2361_s29, %s2648_s4 }
  0x39   :  { %p2367_p12 = pnand %p2365_p11, %p2362_p10 }
  0x3b   :  { %2370 = shalt.err (!%p2367_p12)
}
  0x3c   :  { %s2371_s0 = scalar_lea.vmem %s53_s26, 4096  ;;  %p2376_p0 = scmp.lt.s32.totalorder %s53_s26, %s53_s26 }
  0x3d   :  { %p2372_p13 = scmp.ne.s32.totalorder %s53_s26, %s2371_s0  ;;  %p2377_p1 = scmp.lt.s32.totalorder %s2371_s0, %s2371_s0 }
  0x3f   :  { %p2378_p2 = por %p2377_p1, %p2376_p0 }
  0x41   :  { %p2379_p3 = pnand %p2378_p2, %p2372_p13 }
  0x43   :  { %2382 = shalt.err (!%p2379_p3)
}
  0x44   :  { %58 = dma.hbm_to_vmem [thread:$0]  %s2648_s4, 4096, %s53_s26, [#allocation6], %s2436_s13, %s2436_s13, %s2437_s14  }
  0x45   :  { %s2383_s24 = scalar_lea.hbm %s2654_s10, 2048 }
  0x46   :  { %p2384_p4 = scmp.ne.s32.totalorder %s2654_s10, %s2383_s24  ;;  %p2387_p5 = scmp.lt.u32.totalorder %s2383_s24, %s2654_s10 }
  0x48   :  { %p2389_p6 = pnand %p2387_p5, %p2384_p4 }
  0x4a   :  { %2392 = shalt.err (!%p2389_p6)
}
  0x4b   :  { %s2393_s1 = scalar_lea.vmem %s85_s28, 2048  ;;  %p2398_p8 = scmp.lt.s32.totalorder %s85_s28, %s85_s28 }
  0x4c   :  { %p2394_p7 = scmp.ne.s32.totalorder %s85_s28, %s2393_s1  ;;  %p2399_p9 = scmp.lt.s32.totalorder %s2393_s1, %s2393_s1 }
  0x4e   :  { %p2400_p10 = por %p2399_p9, %p2398_p8 }
  0x50   :  { %p2401_p11 = pnand %p2400_p10, %p2394_p7 }
  0x52   :  { %2404 = shalt.err (!%p2401_p11)
}
  0x53   :  { %s2442_s4 = smov 64   ;;  %s2443_s13 = smov 4  }
  0x54   :  { %90 = dma.hbm_to_vmem [thread:$0]  %s2654_s10, 2048, %s85_s28, [#allocation9], %s2442_s4, %s2442_s4, %s2443_s13  }
  0x55   :  { %2427 = dma.done.wait [#allocation3], 896  }
  0x56   :  { %2428 = vsyncadd [#allocation3], 4294966400 }
  0x57   :  { %2429 = dma.done.wait [#allocation6], 16640  }
  0x58   :  { %2430 = vsyncadd [#allocation6], 4294950656 }
  0x59   :  { %2431 = dma.done.wait [#allocation9], 6144  }
  0x5a   :  { %2432 = vsyncadd [#allocation9], 4294961152  ;;  %v2024_v0 = vld [vmem:[#allocation5 + $0x4] ss:$8 sps:$4 sm:$0xff]   ;;  %v2026_v1 = vld [vmem:[#allocation5] ss:$8 sps:$4 sm:$0xff]  }
  0x5b   :  { %715 = vmatprep.subr.bf16.mxu0 %v2024_v0  ;;  %v2027_v2 = vld [vmem:[#allocation5 + $0x14] ss:$8 sps:$4 sm:$0xff]   ;;  %v2029_v3 = vld [vmem:[#allocation5 + $0x10] ss:$8 sps:$4 sm:$0xff]   ;;  %v2030_v4 = vld [vmem:[#allocation5 + $0x24] ss:$8 sps:$4 sm:$0xff]  }
  0x5c   :  { %716 = vmatpush1.bf16.msra.mxu0 %v2026_v1  ;;  %v2032_v5 = vld [vmem:[#allocation5 + $0x20] ss:$8 sps:$4 sm:$0xff]   ;;  %v2033_v6 = vld [vmem:[#allocation5 + $0x34] ss:$8 sps:$4 sm:$0xff]   ;;  %v2035_v7 = vld [vmem:[#allocation5 + $0x30] ss:$8 sps:$4 sm:$0xff]  }
  0x5d   :  { %717 = vmatprep.subr.bf16.mxu0 %v2027_v2  ;;  %v2036_v8 = vld [vmem:[#allocation5 + $0x44] ss:$8 sps:$4 sm:$0xff]   ;;  %v2038_v9 = vld [vmem:[#allocation5 + $0x40] ss:$8 sps:$4 sm:$0xff]   ;;  %v2039_v10 = vld [vmem:[#allocation5 + $0x54] ss:$8 sps:$4 sm:$0xff]  }
  0x5e   :  { %v2041_v11 = vld [vmem:[#allocation5 + $0x50] ss:$8 sps:$4 sm:$0xff]   ;;  %v2042_v12 = vld [vmem:[#allocation5 + $0x64] ss:$8 sps:$4 sm:$0xff]   ;;  %v2044_v15 = vld [vmem:[#allocation5 + $0x60] ss:$8 sps:$4 sm:$0xff]  }
  0x5f   :  { %v110_v13 = vld [vmem:[#allocation2 + $0x8] sm:$0xff]  ;;  %v2048_v18 = vld [vmem:[#allocation5 + $0x84] ss:$8 sps:$4 sm:$0xff]   ;;  %v2050_v19 = vld [vmem:[#allocation5 + $0x80] ss:$8 sps:$4 sm:$0xff]   ;;  %v2444_v37 = vmov 0  }
  0x60   :  { %718 = vmatpush1.bf16.msra.mxu0 %v2029_v3  ;;  %v117_v14 = vpack.c.bf16 %v110_v13, %v110_v13  ;;  %v2045_v16 = vld [vmem:[#allocation5 + $0x74] ss:$8 sps:$4 sm:$0xff]   ;;  %v2047_v17 = vld [vmem:[#allocation5 + $0x70] ss:$8 sps:$4 sm:$0xff]   ;;  %v2054_v22 = vld [vmem:[#allocation5 + $0xa4] ss:$8 sps:$4 sm:$0xff]   ;;  %870 = vmatprep.mubr.bf16.mxu1 %v2444_v37 }
  0x61   :  { %719 = vmatprep.subr.bf16.mxu0 %v2030_v4  ;;  %v2051_v20 = vld [vmem:[#allocation5 + $0x94] ss:$8 sps:$4 sm:$0xff]   ;;  %v2053_v21 = vld [vmem:[#allocation5 + $0x90] ss:$8 sps:$4 sm:$0xff]   ;;  %v2056_v23 = vld [vmem:[#allocation5 + $0xa0] ss:$8 sps:$4 sm:$0xff]  }
  0x62   :  { %747 = vmatprep.mubr.bf16.mxu0 %v117_v14  ;;  %v2057_v24 = vld [vmem:[#allocation5 + $0xb4] ss:$8 sps:$4 sm:$0xff]   ;;  %v2059_v25 = vld [vmem:[#allocation5 + $0xb0] ss:$8 sps:$4 sm:$0xff]   ;;  %v2060_v26 = vld [vmem:[#allocation5 + $0xc4] ss:$8 sps:$4 sm:$0xff]  }
  0x63   :  { %v2062_v27 = vld [vmem:[#allocation5 + $0xc0] ss:$8 sps:$4 sm:$0xff]   ;;  %v2063_v28 = vld [vmem:[#allocation5 + $0xd4] ss:$8 sps:$4 sm:$0xff]   ;;  %v2065_v29 = vld [vmem:[#allocation5 + $0xd0] ss:$8 sps:$4 sm:$0xff]  }
  0x64   :  { %720 = vmatpush1.bf16.msra.mxu0 %v2032_v5  ;;  %v2066_v30 = vld [vmem:[#allocation5 + $0xe4] ss:$8 sps:$4 sm:$0xff]   ;;  %v2068_v31 = vld [vmem:[#allocation5 + $0xe0] ss:$8 sps:$4 sm:$0xff]   ;;  %v2069_v32 = vld [vmem:[#allocation5 + $0xf4] ss:$8 sps:$4 sm:$0xff]  }
  0x65   :  { %721 = vmatprep.subr.bf16.mxu0 %v2033_v6  ;;  %v2071_v33 = vld [vmem:[#allocation5 + $0xf0] ss:$8 sps:$4 sm:$0xff]   ;;  %v2074_v34 = vld [vmem:[#allocation5 + $0x104] ss:$8 sps:$4 sm:$0xff]   ;;  %v2072_v39 = vld [vmem:[#allocation5 + $0x100] ss:$8 sps:$4 sm:$0xff]  }
  0x66   :  { %v109_v35 = vld [vmem:[#allocation2] sm:$0xff]  ;;  %v112_v36 = vld [vmem:[#allocation2 + $0x18] sm:$0xff]  ;;  %v2077_v40 = vld [vmem:[#allocation5 + $0x114] ss:$8 sps:$4 sm:$0xff]   ;;  %vm711_vm0 = vcmask 130048   ;;  %s2446_s0 = smov [#allocation11]  }
  0x67   :  { %v116_v38 = vpack.c.bf16 %v109_v35, %v109_v35  ;;  %v119_v41 = vpack.c.bf16 %v112_v36, %v112_v36  ;;  %v2165_v42 = vld [vmem:[#allocation5 + $0x304] ss:$8 sps:$4 sm:$0xff]   ;;  %v2167_v43 = vld [vmem:[#allocation5 + $0x300] ss:$8 sps:$4 sm:$0xff]   ;;  %v115_v44 = vld [vmem:[#allocation2 + $0x30] sm:$0xff]  ;;  %s1789_s20 = sshll.u32 %s2446_s0, 4  ;;  %s1790_s20 = int_to_ptr.vmem [resolvable:$true] %s1789_s20 }
  0x68   :  { %722 = vmatpush1.bf16.msra.mxu0 %v2035_v7  ;;  %838 = vmatprep.subr.bf16.mxu1 %v2165_v42  ;;  %v2075_v45 = vld [vmem:[#allocation5 + $0x110] ss:$8 sps:$4 sm:$0xff]   ;;  %v2080_v46 = vld [vmem:[#allocation5 + $0x124] ss:$8 sps:$4 sm:$0xff]   ;;  %v122_v47 = vpack.c.bf16 %v115_v44, %v115_v44  ;;  %v2078_v48 = vld [vmem:[#allocation5 + $0x120] ss:$8 sps:$4 sm:$0xff]   ;;  %p2410_p13 = scmp.lt.s32.totalorder %s1790_s20, %s1790_s20 }
  0x69   :  { %723 = vmatprep.subr.bf16.mxu0 %v2036_v8  ;;  %839 = vmatpush1.bf16.msra.mxu1 %v2167_v43  ;;  %v2083_v49 = vld [vmem:[#allocation5 + $0x134] ss:$8 sps:$4 sm:$0xff]   ;;  %v2081_v50 = vld [vmem:[#allocation5 + $0x130] ss:$8 sps:$4 sm:$0xff]   ;;  %v2086_v51 = vld [vmem:[#allocation5 + $0x144] ss:$8 sps:$4 sm:$0xff]  }
  0x6a   :  { %v2084_v52 = vld [vmem:[#allocation5 + $0x140] ss:$8 sps:$4 sm:$0xff]   ;;  %v2089_v53 = vld [vmem:[#allocation5 + $0x154] ss:$8 sps:$4 sm:$0xff]   ;;  %v2087_v54 = vld [vmem:[#allocation5 + $0x150] ss:$8 sps:$4 sm:$0xff]  }
  0x6b   :  { %v2092_v55 = vld [vmem:[#allocation5 + $0x164] ss:$8 sps:$4 sm:$0xff]   ;;  %v2090_v56 = vld [vmem:[#allocation5 + $0x160] ss:$8 sps:$4 sm:$0xff]   ;;  %v2095_v57 = vld [vmem:[#allocation5 + $0x174] ss:$8 sps:$4 sm:$0xff]  }
  0x6c   :  { %724 = vmatpush1.bf16.msra.mxu0 %v2038_v9  ;;  %1898 = vmatmul.mubr.msk.bf16.vlgmr.msra.gmra.mrb[0].mxu1 %vm711_vm0, %v122_v47  ;;  %v2093_v58 = vld [vmem:[#allocation5 + $0x170] ss:$8 sps:$4 sm:$0xff]   ;;  %v2098_v59 = vld [vmem:[#allocation5 + $0x184] ss:$8 sps:$4 sm:$0xff]   ;;  %v2096_v60 = vld [vmem:[#allocation5 + $0x180] ss:$8 sps:$4 sm:$0xff]  }
  0x6d   :  { %725 = vmatprep.subr.bf16.mxu0 %v2039_v10  ;;  %v2101_v61 = vld [vmem:[#allocation5 + $0x194] ss:$8 sps:$4 sm:$0xff]   ;;  %v2099_v62 = vld [vmem:[#allocation5 + $0x190] ss:$8 sps:$4 sm:$0xff]   ;;  %v2104_v63 = vld [vmem:[#allocation5 + $0x1a4] ss:$8 sps:$4 sm:$0xff]  }
  0x6e   :  { %v2102_v0 = vld [vmem:[#allocation5 + $0x1a0] ss:$8 sps:$4 sm:$0xff]   ;;  %v2107_v1 = vld [vmem:[#allocation5 + $0x1b4] ss:$8 sps:$4 sm:$0xff]   ;;  %v2105_v2 = vld [vmem:[#allocation5 + $0x1b0] ss:$8 sps:$4 sm:$0xff]  }
  0x6f   :  { %v2110_v3 = vld [vmem:[#allocation5 + $0x1c4] ss:$8 sps:$4 sm:$0xff]   ;;  %v2108_v4 = vld [vmem:[#allocation5 + $0x1c0] ss:$8 sps:$4 sm:$0xff]   ;;  %v2113_v5 = vld [vmem:[#allocation5 + $0x1d4] ss:$8 sps:$4 sm:$0xff]  }
  0x70   :  { %726 = vmatpush1.bf16.msra.mxu0 %v2041_v11  ;;  %v2111_v6 = vld [vmem:[#allocation5 + $0x1d0] ss:$8 sps:$4 sm:$0xff]   ;;  %v2116_v7 = vld [vmem:[#allocation5 + $0x1e4] ss:$8 sps:$4 sm:$0xff]   ;;  %v2114_v8 = vld [vmem:[#allocation5 + $0x1e0] ss:$8 sps:$4 sm:$0xff]  }
  0x71   :  { %727 = vmatprep.subr.bf16.mxu0 %v2042_v12  ;;  %v2119_v9 = vld [vmem:[#allocation5 + $0x1f4] ss:$8 sps:$4 sm:$0xff]   ;;  %v2117_v10 = vld [vmem:[#allocation5 + $0x1f0] ss:$8 sps:$4 sm:$0xff]   ;;  %v2122_v12 = vld [vmem:[#allocation5 + $0x204] ss:$8 sps:$4 sm:$0xff]  }
  0x72   :  { %v111_v11 = vld [vmem:[#allocation2 + $0x10] sm:$0xff]  ;;  %v114_v13 = vld [vmem:[#allocation2 + $0x28] sm:$0xff]  ;;  %v2152_v35 = vld [vmem:[#allocation5 + $0x2a4] ss:$8 sps:$4 sm:$0xff]   ;;  %s2405_s19 = scalar_lea.vmem %s1790_s20, 128 }
  0x73   :  { %v118_v14 = vpack.c.bf16 %v111_v11, %v111_v11  ;;  %v2150_v36 = vld [vmem:[#allocation5 + $0x2a0] ss:$8 sps:$4 sm:$0xff]   ;;  %v2155_v37 = vld [vmem:[#allocation5 + $0x2b4] ss:$8 sps:$4 sm:$0xff]   ;;  %v2159_v42 = vld [vmem:[#allocation5 + $0x2d0] ss:$8 sps:$4 sm:$0xff]   ;;  %p2406_p12 = scmp.ne.s32.totalorder %s1790_s20, %s2405_s19  ;;  %p2411_p0 = scmp.lt.s32.totalorder %s2405_s19, %s2405_s19 }
  0x74   :  { %728 = vmatpush1.bf16.msra.mxu0 %v2044_v15  ;;  %v2120_v15 = vld [vmem:[#allocation5 + $0x200] ss:$8 sps:$4 sm:$0xff]   ;;  %v2164_v43 = vld [vmem:[#allocation5 + $0x2e4] ss:$8 sps:$4 sm:$0xff]  }
  0x75   :  { %729 = vmatprep.subr.bf16.mxu0 %v2045_v16  ;;  %v121_v16 = vpack.c.bf16 %v114_v13, %v114_v13  ;;  %v2162_v44 = vld [vmem:[#allocation5 + $0x2e0] ss:$8 sps:$4 sm:$0xff]   ;;  %v2206_v11 = vld [vmem:[#allocation7 + $0xb4] ss:$8 sps:$4 sm:$0xff]   ;;  %v2209_v13 = vld [vmem:[#allocation7 + $0xc4] ss:$8 sps:$4 sm:$0xff]   ;;  %p2412_p1 = por %p2411_p0, %p2410_p13 }
  0x76   :  { %v113_v47 = vld [vmem:[#allocation2 + $0x20] sm:$0xff] }
  0x77   :  { %p2413_p2 = pnand %p2412_p1, %p2406_p12 }
  0x78   :  { %730 = vmatpush1.bf16.msra.mxu0 %v2047_v17  ;;  %v2125_v17 = vld [vmem:[#allocation5 + $0x214] ss:$8 sps:$4 sm:$0xff]  }
  0x79   :  { %731 = vmatprep.subr.bf16.mxu0 %v2048_v18  ;;  %v2123_v18 = vld [vmem:[#allocation5 + $0x210] ss:$8 sps:$4 sm:$0xff]  }
  0x7c   :  { %732 = vmatpush1.bf16.msra.mxu0 %v2050_v19  ;;  %v2128_v19 = vld [vmem:[#allocation5 + $0x224] ss:$8 sps:$4 sm:$0xff]  }
  0x7d   :  { %733 = vmatprep.subr.bf16.mxu0 %v2051_v20  ;;  %v2126_v20 = vld [vmem:[#allocation5 + $0x220] ss:$8 sps:$4 sm:$0xff]  }
  0x80   :  { %734 = vmatpush1.bf16.msra.mxu0 %v2053_v21  ;;  %v2131_v21 = vld [vmem:[#allocation5 + $0x234] ss:$8 sps:$4 sm:$0xff]  }
  0x81   :  { %735 = vmatprep.subr.bf16.mxu0 %v2054_v22  ;;  %v2129_v22 = vld [vmem:[#allocation5 + $0x230] ss:$8 sps:$4 sm:$0xff]  }
  0x84   :  { %736 = vmatpush1.bf16.msra.mxu0 %v2056_v23  ;;  %v2134_v23 = vld [vmem:[#allocation5 + $0x244] ss:$8 sps:$4 sm:$0xff]  }
  0x85   :  { %737 = vmatprep.subr.bf16.mxu0 %v2057_v24  ;;  %v2132_v24 = vld [vmem:[#allocation5 + $0x240] ss:$8 sps:$4 sm:$0xff]  }
  0x88   :  { %738 = vmatpush1.bf16.msra.mxu0 %v2059_v25  ;;  %v2137_v25 = vld [vmem:[#allocation5 + $0x254] ss:$8 sps:$4 sm:$0xff]  }
  0x89   :  { %739 = vmatprep.subr.bf16.mxu0 %v2060_v26  ;;  %v2135_v26 = vld [vmem:[#allocation5 + $0x250] ss:$8 sps:$4 sm:$0xff]  }
  0x8c   :  { %740 = vmatpush1.bf16.msra.mxu0 %v2062_v27  ;;  %v2140_v27 = vld [vmem:[#allocation5 + $0x264] ss:$8 sps:$4 sm:$0xff]  }
  0x8d   :  { %741 = vmatprep.subr.bf16.mxu0 %v2063_v28  ;;  %v2138_v28 = vld [vmem:[#allocation5 + $0x260] ss:$8 sps:$4 sm:$0xff]  }
  0x90   :  { %742 = vmatpush1.bf16.msra.mxu0 %v2065_v29  ;;  %v2143_v29 = vld [vmem:[#allocation5 + $0x274] ss:$8 sps:$4 sm:$0xff]  }
  0x91   :  { %743 = vmatprep.subr.bf16.mxu0 %v2066_v30  ;;  %v2141_v30 = vld [vmem:[#allocation5 + $0x270] ss:$8 sps:$4 sm:$0xff]  }
  0x94   :  { %744 = vmatpush1.bf16.msra.mxu0 %v2068_v31  ;;  %v2146_v31 = vld [vmem:[#allocation5 + $0x284] ss:$8 sps:$4 sm:$0xff]  }
  0x95   :  { %745 = vmatprep.subr.bf16.mxu0 %v2069_v32  ;;  %v2144_v32 = vld [vmem:[#allocation5 + $0x280] ss:$8 sps:$4 sm:$0xff]  }
  0x98   :  { %746 = vmatpush1.bf16.msra.mxu0 %v2071_v33  ;;  %v2149_v33 = vld [vmem:[#allocation5 + $0x294] ss:$8 sps:$4 sm:$0xff]  }
  0x99   :  { %756 = vmatprep.subr.bf16.mxu0 %v2074_v34  ;;  %v2147_v34 = vld [vmem:[#allocation5 + $0x290] ss:$8 sps:$4 sm:$0xff]  }
  0x9b   :  { %748 = vmatmul.mubr.bf16.vlgmr.msra.gmra.mrb[0].mxu0 %v116_v38  ;;  %v2153_v38 = vld [vmem:[#allocation5 + $0x2b0] ss:$8 sps:$4 sm:$0xff]  }
  0x9c   :  { %757 = vmatpush1.bf16.msra.mxu0 %v2072_v39  ;;  %788 = vmatprep.mubr.bf16.mxu0 %v119_v41  ;;  %v2158_v39 = vld [vmem:[#allocation5 + $0x2c4] ss:$8 sps:$4 sm:$0xff]   ;;  %v2161_v41 = vld [vmem:[#allocation5 + $0x2d4] ss:$8 sps:$4 sm:$0xff]  }
  0x9d   :  { %758 = vmatprep.subr.bf16.mxu0 %v2077_v40  ;;  %v2156_v40 = vld [vmem:[#allocation5 + $0x2c0] ss:$8 sps:$4 sm:$0xff]  }
  0xa0   :  { %759 = vmatpush1.bf16.msra.mxu0 %v2075_v45  ;;  %v2170_v45 = vld [vmem:[#allocation5 + $0x2f4] ss:$8 sps:$4 sm:$0xff]  }
  0xa1   :  { %760 = vmatprep.subr.bf16.mxu0 %v2080_v46  ;;  %v2168_v46 = vld [vmem:[#allocation5 + $0x2f0] ss:$8 sps:$4 sm:$0xff]  }
  0xa4   :  { %761 = vmatpush1.bf16.msra.mxu0 %v2078_v48  ;;  %v120_v48 = vpack.c.bf16 %v113_v47, %v113_v47 }
  0xa5   :  { %762 = vmatprep.subr.bf16.mxu0 %v2083_v49  ;;  %v2173_v49 = vld [vmem:[#allocation7 + $0x4] ss:$8 sps:$4 sm:$0xff]  }
  0xa6   :  { %1159 = vmatprep.subr.bf16.mxu1 %v2173_v49 }
  0xa8   :  { %763 = vmatpush1.bf16.msra.mxu0 %v2081_v50  ;;  %v2171_v50 = vld [vmem:[#allocation7] ss:$8 sps:$4 sm:$0xff]  }
  0xa9   :  { %764 = vmatprep.subr.bf16.mxu0 %v2086_v51  ;;  %1160 = vmatpush1.bf16.msra.mxu1 %v2171_v50 }
  0xac   :  { %765 = vmatpush1.bf16.msra.mxu0 %v2084_v52 }
  0xad   :  { %766 = vmatprep.subr.bf16.mxu0 %v2089_v53  ;;  %v2176_v53 = vld [vmem:[#allocation7 + $0x14] ss:$8 sps:$4 sm:$0xff]  }
  0xae   :  { %1161 = vmatprep.subr.bf16.mxu1 %v2176_v53 }
  0xb0   :  { %767 = vmatpush1.bf16.msra.mxu0 %v2087_v54 }
  0xb1   :  { %768 = vmatprep.subr.bf16.mxu0 %v2092_v55  ;;  %v2174_v55 = vld [vmem:[#allocation7 + $0x10] ss:$8 sps:$4 sm:$0xff]  }
  0xb2   :  { %1162 = vmatpush1.bf16.msra.mxu1 %v2174_v55 }
  0xb4   :  { %769 = vmatpush1.bf16.msra.mxu0 %v2090_v56 }
  0xb5   :  { %770 = vmatprep.subr.bf16.mxu0 %v2095_v57  ;;  %v2179_v57 = vld [vmem:[#allocation7 + $0x24] ss:$8 sps:$4 sm:$0xff]  }
  0xb6   :  { %1163 = vmatprep.subr.bf16.mxu1 %v2179_v57 }
  0xb8   :  { %771 = vmatpush1.bf16.msra.mxu0 %v2093_v58  ;;  %v2177_v58 = vld [vmem:[#allocation7 + $0x20] ss:$8 sps:$4 sm:$0xff]  }
  0xb9   :  { %772 = vmatprep.subr.bf16.mxu0 %v2098_v59  ;;  %1164 = vmatpush1.bf16.msra.mxu1 %v2177_v58  ;;  %v2182_v59 = vld [vmem:[#allocation7 + $0x34] ss:$8 sps:$4 sm:$0xff]  }
  0xba   :  { %1165 = vmatprep.subr.bf16.mxu1 %v2182_v59 }
  0xbc   :  { %773 = vmatpush1.bf16.msra.mxu0 %v2096_v60  ;;  %v2180_v60 = vld [vmem:[#allocation7 + $0x30] ss:$8 sps:$4 sm:$0xff]  }
  0xbd   :  { %774 = vmatprep.subr.bf16.mxu0 %v2101_v61  ;;  %1166 = vmatpush1.bf16.msra.mxu1 %v2180_v60  ;;  %v2185_v61 = vld [vmem:[#allocation7 + $0x44] ss:$8 sps:$4 sm:$0xff]  }
  0xbe   :  { %1167 = vmatprep.subr.bf16.mxu1 %v2185_v61  ;;  %v2445_v61 = vmov 1966171168  }
  0xc0   :  { %775 = vmatpush1.bf16.msra.mxu0 %v2099_v62  ;;  %v2183_v62 = vld [vmem:[#allocation7 + $0x40] ss:$8 sps:$4 sm:$0xff]  }
  0xc1   :  { %776 = vmatprep.subr.bf16.mxu0 %v2104_v63  ;;  %1168 = vmatpush1.bf16.msra.mxu1 %v2183_v62  ;;  %v2188_v63 = vld [vmem:[#allocation7 + $0x54] ss:$8 sps:$4 sm:$0xff]   ;;  %v921_v62 = vunpack.c.l.s4 %v2445_v61 }
  0xc2   :  { %1169 = vmatprep.subr.bf16.mxu1 %v2188_v63  ;;  %v923_v63 = vlaneseq }
  0xc4   :  { %777 = vmatpush1.bf16.msra.mxu0 %v2102_v0  ;;  %v2186_v0 = vld [vmem:[#allocation7 + $0x50] ss:$8 sps:$4 sm:$0xff]  }
  0xc5   :  { %778 = vmatprep.subr.bf16.mxu0 %v2107_v1  ;;  %1170 = vmatpush1.bf16.msra.mxu1 %v2186_v0  ;;  %v2191_v1 = vld [vmem:[#allocation7 + $0x64] ss:$8 sps:$4 sm:$0xff]   ;;  %v922_v0 = vunpack.c.0.s8 %v921_v62 }
  0xc6   :  { %1171 = vmatprep.subr.bf16.mxu1 %v2191_v1  ;;  %v924_v1 = vshrl.u32 %v923_v63, 7 }
  0xc8   :  { %779 = vmatpush1.bf16.msra.mxu0 %v2105_v2  ;;  %v2189_v2 = vld [vmem:[#allocation7 + $0x60] ss:$8 sps:$4 sm:$0xff]  }
  0xc9   :  { %780 = vmatprep.subr.bf16.mxu0 %v2110_v3  ;;  %1172 = vmatpush1.bf16.msra.mxu1 %v2189_v2  ;;  %v2194_v3 = vld [vmem:[#allocation7 + $0x74] ss:$8 sps:$4 sm:$0xff]  }
  0xca   :  { %1173 = vmatprep.subr.bf16.mxu1 %v2194_v3  ;;  %v2587_v3 = vsub.s32 %v922_v0, %v924_v1 }
  0xcc   :  { %781 = vmatpush1.bf16.msra.mxu0 %v2108_v4  ;;  %v2192_v4 = vld [vmem:[#allocation7 + $0x70] ss:$8 sps:$4 sm:$0xff]  }
  0xcd   :  { %782 = vmatprep.subr.bf16.mxu0 %v2113_v5  ;;  %1174 = vmatpush1.bf16.msra.mxu1 %v2192_v4  ;;  %v2197_v5 = vld [vmem:[#allocation7 + $0x84] ss:$8 sps:$4 sm:$0xff]  }
  0xce   :  { %1175 = vmatprep.subr.bf16.mxu1 %v2197_v5 }
  0xd0   :  { %783 = vmatpush1.bf16.msra.mxu0 %v2111_v6  ;;  %v2195_v6 = vld [vmem:[#allocation7 + $0x80] ss:$8 sps:$4 sm:$0xff]  }
  0xd1   :  { %784 = vmatprep.subr.bf16.mxu0 %v2116_v7  ;;  %1176 = vmatpush1.bf16.msra.mxu1 %v2195_v6  ;;  %v2198_v7 = vld [vmem:[#allocation7 + $0x90] ss:$8 sps:$4 sm:$0xff]  }
  0xd4   :  { %785 = vmatpush1.bf16.msra.mxu0 %v2114_v8  ;;  %v2200_v8 = vld [vmem:[#allocation7 + $0x94] ss:$8 sps:$4 sm:$0xff]  }
  0xd5   :  { %786 = vmatprep.subr.bf16.mxu0 %v2119_v9  ;;  %v2203_v9 = vld [vmem:[#allocation7 + $0xa4] ss:$8 sps:$4 sm:$0xff]   ;;  %1177 = vmatprep.subr.bf16.mxu1 %v2200_v8 }
  0xd6   :  { %1178 = vmatpush1.bf16.msra.mxu1 %v2198_v7  ;;  %v912_v7 = vld [vmem:[%s2646_s2] sm:$0x3] }
  0xd7   :  { %1179 = vmatprep.subr.bf16.mxu1 %v2203_v9  ;;  %v2594_v9 = vsub.s32 0, %v924_v1 }
  0xd8   :  { %787 = vmatpush1.bf16.msra.mxu0 %v2117_v10  ;;  %v2201_v10 = vld [vmem:[#allocation7 + $0xa0] ss:$8 sps:$4 sm:$0xff]  }
  0xd9   :  { %797 = vmatprep.subr.bf16.mxu0 %v2122_v12  ;;  %v2204_v12 = vld [vmem:[#allocation7 + $0xb0] ss:$8 sps:$4 sm:$0xff]  }
  0xda   :  { %1180 = vmatpush1.bf16.msra.mxu1 %v2201_v10  ;;  %v2596_v10 = vsub.s32 1, %v924_v1 }
  0xdb   :  { %789 = vmatmul.mubr.bf16.vlgmr.msra.gmra.mrb[0].mxu0 %v118_v14  ;;  %1181 = vmatprep.subr.bf16.mxu1 %v2206_v11  ;;  %v2207_v14 = vld [vmem:[#allocation7 + $0xc0] ss:$8 sps:$4 sm:$0xff]   ;;  %v949_v11 = vld [vmem:[%s2647_s3] sm:$0x3] }
  0xdc   :  { %798 = vmatpush1.bf16.msra.mxu0 %v2120_v15  ;;  %829 = vmatprep.mubr.bf16.mxu0 %v121_v16  ;;  %v2212_v15 = vld [vmem:[#allocation7 + $0xd4] ss:$8 sps:$4 sm:$0xff]   ;;  %v2210_v16 = vld [vmem:[#allocation7 + $0xd0] ss:$8 sps:$4 sm:$0xff]  }
  0xdd   :  { %799 = vmatprep.subr.bf16.mxu0 %v2125_v17  ;;  %v2215_v17 = vld [vmem:[#allocation7 + $0xe4] ss:$8 sps:$4 sm:$0xff]  }
  0xde   :  { %1182 = vmatpush1.bf16.msra.mxu1 %v2204_v12 }
  0xdf   :  { %1183 = vmatprep.subr.bf16.mxu1 %v2209_v13 }
  0xe0   :  { %800 = vmatpush1.bf16.msra.mxu0 %v2123_v18  ;;  %v2213_v18 = vld [vmem:[#allocation7 + $0xe0] ss:$8 sps:$4 sm:$0xff]  }
  0xe1   :  { %801 = vmatprep.subr.bf16.mxu0 %v2128_v19  ;;  %v2218_v19 = vld [vmem:[#allocation7 + $0xf4] ss:$8 sps:$4 sm:$0xff]  }
  0xe2   :  { %1184 = vmatpush1.bf16.msra.mxu1 %v2207_v14  ;;  %v954_v14 = vrot.slane %v949_v11, %v2594_v9 }
  0xe3   :  { %1185 = vmatprep.subr.bf16.mxu1 %v2212_v15  ;;  %v958_v15 = vrot.slane %v949_v11, %v2596_v10 }
  0xe4   :  { %802 = vmatpush1.bf16.msra.mxu0 %v2126_v20  ;;  %v2216_v20 = vld [vmem:[#allocation7 + $0xf0] ss:$8 sps:$4 sm:$0xff]  }
  0xe5   :  { %803 = vmatprep.subr.bf16.mxu0 %v2131_v21 }
  0xe6   :  { %1186 = vmatpush1.bf16.msra.mxu1 %v2210_v16 }
  0xe7   :  { %1187 = vmatprep.subr.bf16.mxu1 %v2215_v17 }
  0xe8   :  { %804 = vmatpush1.bf16.msra.mxu0 %v2129_v22 }
  0xe9   :  { %805 = vmatprep.subr.bf16.mxu0 %v2134_v23 }
  0xea   :  { %1188 = vmatpush1.bf16.msra.mxu1 %v2213_v18 }
  0xeb   :  { %1189 = vmatprep.subr.bf16.mxu1 %v2218_v19 }
  0xec   :  { %806 = vmatpush1.bf16.msra.mxu0 %v2132_v24 }
  0xed   :  { %807 = vmatprep.subr.bf16.mxu0 %v2137_v25 }
  0xee   :  { %1190 = vmatpush1.bf16.msra.mxu1 %v2216_v20 }
  0xf0   :  { %808 = vmatpush1.bf16.msra.mxu0 %v2135_v26 }
  0xf1   :  { %809 = vmatprep.subr.bf16.mxu0 %v2140_v27 }
  0xf4   :  { %810 = vmatpush1.bf16.msra.mxu0 %v2138_v28 }
  0xf5   :  { %811 = vmatprep.subr.bf16.mxu0 %v2143_v29 }
  0xf8   :  { %812 = vmatpush1.bf16.msra.mxu0 %v2141_v30 }
  0xf9   :  { %813 = vmatprep.subr.bf16.mxu0 %v2146_v31 }
  0xfc   :  { %814 = vmatpush1.bf16.msra.mxu0 %v2144_v32 }
  0xfd   :  { %815 = vmatprep.subr.bf16.mxu0 %v2149_v33 }
 0x100   :  { %816 = vmatpush1.bf16.msra.mxu0 %v2147_v34 }
 0x101   :  { %817 = vmatprep.subr.bf16.mxu0 %v2152_v35 }
 0x104   :  { %818 = vmatpush1.bf16.msra.mxu0 %v2150_v36 }
 0x105   :  { %819 = vmatprep.subr.bf16.mxu0 %v2155_v37 }
 0x108   :  { %820 = vmatpush1.bf16.msra.mxu0 %v2153_v38 }
 0x109   :  { %821 = vmatprep.subr.bf16.mxu0 %v2158_v39 }
 0x10c   :  { %822 = vmatpush1.bf16.msra.mxu0 %v2156_v40 }
 0x10d   :  { %823 = vmatprep.subr.bf16.mxu0 %v2161_v41 }
 0x110   :  { %824 = vmatpush1.bf16.msra.mxu0 %v2159_v42 }
 0x111   :  { %825 = vmatprep.subr.bf16.mxu0 %v2164_v43 }
 0x114   :  { %826 = vmatpush1.bf16.msra.mxu0 %v2162_v44 }
 0x115   :  { %827 = vmatprep.subr.bf16.mxu0 %v2170_v45 }
 0x118   :  { %828 = vmatpush1.bf16.msra.mxu0 %v2168_v46 }
 0x11b   :  { %830 = vmatmul.mubr.bf16.vlgmr.msra.gmra.mrb[0].mxu0 %v120_v48 }
 0x13f   :  { %v2581_v51 = vpop.f32.mrb[0].mxu1 }
 0x140   :  { %v2583_v52 = vpop.f32.mrb[1].mxu1 }
 0x141   :  { %v876_v54 = vpop.f32.mrb[2].mxu1 }
 0x142   :  { %v877_v56 = vpop.f32.mrb[3].mxu1 }
 0x1ee   :  { %v831_v21 = vpop.f32.mrb[0].mxu0 }
 0x1ef   :  { %v2002_v22 = vadd.f32 %v2581_v51, %v831_v21  ;;  %v833_v23 = vpop.f32.mrb[1].mxu0 }
 0x1f0   :  { %v2003_v24 = vadd.f32 %v2583_v52, %v833_v23  ;;  %v835_v25 = vpop.f32.mrb[2].mxu0 }
 0x1f1   :  { %v879_v26 = vrot.slane %v2002_v22, 4  ;;  %v836_v27 = vpop.f32.mrb[3].mxu0  ;;  %v2221_v25 = vld [vmem:[#allocation8 + $0x4] ss:$8 sps:$4 sm:$0xff]  }
 0x1f2   :  { %v885_v28 = vrot.slane %v2003_v24, 4  ;;  %1479 = vmatprep.subr.bf16.mxu1 %v2221_v25  ;;  %v2224_v27 = vld [vmem:[#allocation8 + $0x14] ss:$8 sps:$4 sm:$0xff]  }
 0x1f3   :  { %v880_v29 = vadd.f32 %v2002_v22, %v879_v26  ;;  %v2219_v26 = vld [vmem:[#allocation8] ss:$8 sps:$4 sm:$0xff]  }
 0x1f4   :  { %v886_v30 = vadd.f32 %v2003_v24, %v885_v28  ;;  %v2222_v28 = vld [vmem:[#allocation8 + $0x10] ss:$8 sps:$4 sm:$0xff]  }
 0x1f5   :  { %v881_v31 = vrot.slane %v880_v29, 2 }
 0x1f6   :  { %v887_v32 = vrot.slane %v886_v30, 2 }
 0x1f7   :  { %v882_v33 = vadd.f32 %v881_v31, %v880_v29  ;;  %v2227_v29 = vld [vmem:[#allocation8 + $0x24] ss:$8 sps:$4 sm:$0xff]   ;;  %v2230_v31 = vld [vmem:[#allocation8 + $0x34] ss:$8 sps:$4 sm:$0xff]  }
 0x1f8   :  { %v888_v34 = vadd.f32 %v887_v32, %v886_v30  ;;  %v2225_v30 = vld [vmem:[#allocation8 + $0x20] ss:$8 sps:$4 sm:$0xff]   ;;  %v2228_v32 = vld [vmem:[#allocation8 + $0x30] ss:$8 sps:$4 sm:$0xff]  }
 0x1f9   :  { %v883_v35 = vrot.slane %v882_v33, 1 }
 0x1fa   :  { %v889_v36 = vrot.slane %v888_v34, 1 }
 0x1fb   :  { %v884_v37 = vadd.f32 %v883_v35, %v882_v33  ;;  %v2233_v33 = vld [vmem:[#allocation8 + $0x44] ss:$8 sps:$4 sm:$0xff]   ;;  %v2236_v35 = vld [vmem:[#allocation8 + $0x54] ss:$8 sps:$4 sm:$0xff]  }
 0x1fc   :  { %v890_v38 = vadd.f32 %v889_v36, %v888_v34  ;;  %v2231_v34 = vld [vmem:[#allocation8 + $0x40] ss:$8 sps:$4 sm:$0xff]   ;;  %v2234_v36 = vld [vmem:[#allocation8 + $0x50] ss:$8 sps:$4 sm:$0xff]  }
 0x1fd   :  { %v892_v39 = vmul.f32 0.125, %v884_v37  ;;  %v2239_v37 = vld [vmem:[#allocation8 + $0x64] ss:$8 sps:$4 sm:$0xff]  }
 0x1fe   :  { %v893_v40 = vmul.f32 0.125, %v890_v38  ;;  %v2237_v38 = vld [vmem:[#allocation8 + $0x60] ss:$8 sps:$4 sm:$0xff]  }
 0x1ff   :  { %v894_v41 = vsub.f32 %v2002_v22, %v892_v39  ;;  %v2242_v39 = vld [vmem:[#allocation8 + $0x74] ss:$8 sps:$4 sm:$0xff]  }
 0x200   :  { %v895_v42 = vsub.f32 %v2003_v24, %v893_v40  ;;  %v2240_v40 = vld [vmem:[#allocation8 + $0x70] ss:$8 sps:$4 sm:$0xff]  }
 0x201   :  { %v896_v43 = vmul.f32 %v894_v41, %v894_v41 }
 0x202   :  { %v897_v44 = vmul.f32 %v895_v42, %v895_v42 }
 0x203   :  { %v898_v45 = vrot.slane %v896_v43, 4 }
 0x204   :  { %v904_v46 = vrot.slane %v897_v44, 4 }
 0x205   :  { %v899_v47 = vadd.f32 %v898_v45, %v896_v43  ;;  %v2248_v43 = vld [vmem:[#allocation8 + $0x94] ss:$8 sps:$4 sm:$0xff]   ;;  %v2251_v45 = vld [vmem:[#allocation8 + $0xa4] ss:$8 sps:$4 sm:$0xff]  }
 0x206   :  { %v905_v48 = vadd.f32 %v904_v46, %v897_v44  ;;  %v2246_v44 = vld [vmem:[#allocation8 + $0x90] ss:$8 sps:$4 sm:$0xff]   ;;  %v2249_v46 = vld [vmem:[#allocation8 + $0xa0] ss:$8 sps:$4 sm:$0xff]  }
 0x207   :  { %v900_v49 = vrot.slane %v899_v47, 2 }
 0x208   :  { %v906_v50 = vrot.slane %v905_v48, 2 }
 0x209   :  { %v901_v51 = vadd.f32 %v900_v49, %v899_v47  ;;  %v2254_v47 = vld [vmem:[#allocation8 + $0xb4] ss:$8 sps:$4 sm:$0xff]   ;;  %v2257_v49 = vld [vmem:[#allocation8 + $0xc4] ss:$8 sps:$4 sm:$0xff]  }
 0x20a   :  { %v907_v52 = vadd.f32 %v906_v50, %v905_v48  ;;  %v2252_v48 = vld [vmem:[#allocation8 + $0xb0] ss:$8 sps:$4 sm:$0xff]   ;;  %v2255_v50 = vld [vmem:[#allocation8 + $0xc0] ss:$8 sps:$4 sm:$0xff]  }
 0x20b   :  { %v902_v53 = vrot.slane %v901_v51, 1 }
 0x20c   :  { %v908_v54 = vrot.slane %v907_v52, 1 }
 0x20d   :  { %v903_v55 = vadd.f32 %v902_v53, %v901_v51  ;;  %v2260_v51 = vld [vmem:[#allocation8 + $0xd4] ss:$8 sps:$4 sm:$0xff]   ;;  %v2263_v53 = vld [vmem:[#allocation8 + $0xe4] ss:$8 sps:$4 sm:$0xff]  }
 0x20e   :  { %v909_v56 = vadd.f32 %v908_v54, %v907_v52  ;;  %v2258_v52 = vld [vmem:[#allocation8 + $0xd0] ss:$8 sps:$4 sm:$0xff]   ;;  %v2261_v54 = vld [vmem:[#allocation8 + $0xe0] ss:$8 sps:$4 sm:$0xff]  }
 0x20f   :  { %v910_v57 = vmul.f32 0.125, %v903_v55  ;;  %v2266_v55 = vld [vmem:[#allocation8 + $0xf4] ss:$8 sps:$4 sm:$0xff]  }
 0x210   :  { %v911_v58 = vmul.f32 0.125, %v909_v56  ;;  %v2264_v56 = vld [vmem:[#allocation8 + $0xf0] ss:$8 sps:$4 sm:$0xff]  }
 0x211   :  { %v913_v59 = vadd.f32 1e-05, %v910_v57 }
 0x212   :  { %v914_v60 = vadd.f32 1e-05, %v911_v58 }
 0x213   :  { %2283 = vrsqrt.f32 %v913_v59 }
 0x214   :  { %2285 = vrsqrt.f32 %v914_v60 }
 0x21d   :  { %v2284_v2 = vpop.eup %2283 }
 0x21e   :  { %v2286_v4 = vpop.eup %2285 }
 0x21f   :  { %v919_v5 = vcombine.low %v2284_v2, %v2286_v4 }
 0x221   :  { %v926_v6 = vrot.slane %v919_v5, %v2587_v3 }
 0x223   :  { %v933_v8 = vrot.slane %v926_v6, %v2587_v3 }
 0x225   :  { %v935_v12 = vmul.f32 %v933_v8, %v912_v7 }
 0x227   :  { %v944_v13 = vrot.slane %v935_v12, %v2596_v10  ;;  %v940_v16 = vrot.slane %v935_v12, %v2594_v9 }
 0x229   :  { %v948_v17 = vmul.f32 %v944_v13, %v895_v42  ;;  %v947_v18 = vmul.f32 %v940_v16, %v894_v41  ;;  %v2245_v41 = vld [vmem:[#allocation8 + $0x84] ss:$8 sps:$4 sm:$0xff]   ;;  %v2243_v42 = vld [vmem:[#allocation8 + $0x80] ss:$8 sps:$4 sm:$0xff]  }
 0x22b   :  { %v962_v19 = vadd.f32 %v958_v15, %v948_v17  ;;  %v961_v20 = vadd.f32 %v954_v14, %v947_v18 }
 0x22d   :  { %v964_v21 = vmax.f32 %v962_v19, 0.0  ;;  %v963_v22 = vmax.f32 %v961_v20, 0.0 }
 0x22f   :  { %v966_v23 = vpack.c.bf16 %v964_v21, %v964_v21  ;;  %v965_v24 = vpack.c.bf16 %v963_v22, %v963_v22 }
 0x231   :  { %1191 = vmatprep.mubr.bf16.mxu1 %v966_v23 }
 0x232   :  { %1192 = vmatmul.mubr.bf16.vlgmr.msra.gmra.mrb[4].mxu1 %v965_v24 }
 0x233   :  { %1480 = vmatpush1.bf16.msra.mxu1 %v2219_v26 }
 0x234   :  { %1481 = vmatprep.subr.bf16.mxu1 %v2224_v27 }
 0x237   :  { %1482 = vmatpush1.bf16.msra.mxu1 %v2222_v28 }
 0x238   :  { %1483 = vmatprep.subr.bf16.mxu1 %v2227_v29 }
 0x23b   :  { %1484 = vmatpush1.bf16.msra.mxu1 %v2225_v30 }
 0x23c   :  { %1485 = vmatprep.subr.bf16.mxu1 %v2230_v31 }
 0x23f   :  { %1486 = vmatpush1.bf16.msra.mxu1 %v2228_v32 }
 0x240   :  { %1487 = vmatprep.subr.bf16.mxu1 %v2233_v33 }
 0x243   :  { %1488 = vmatpush1.bf16.msra.mxu1 %v2231_v34 }
 0x244   :  { %1489 = vmatprep.subr.bf16.mxu1 %v2236_v35 }
 0x247   :  { %1490 = vmatpush1.bf16.msra.mxu1 %v2234_v36 }
 0x248   :  { %1491 = vmatprep.subr.bf16.mxu1 %v2239_v37 }
 0x24b   :  { %1492 = vmatpush1.bf16.msra.mxu1 %v2237_v38  ;;  %v1232_v38 = vld [vmem:[%s2649_s5] sm:$0x3] }
 0x24c   :  { %1493 = vmatprep.subr.bf16.mxu1 %v2242_v39 }
 0x24f   :  { %1494 = vmatpush1.bf16.msra.mxu1 %v2240_v40  ;;  %v1269_v40 = vld [vmem:[%s2650_s6] sm:$0x3] }
 0x250   :  { %1495 = vmatprep.subr.bf16.mxu1 %v2245_v41 }
 0x253   :  { %1496 = vmatpush1.bf16.msra.mxu1 %v2243_v42 }
 0x254   :  { %1497 = vmatprep.subr.bf16.mxu1 %v2248_v43 }
 0x257   :  { %1498 = vmatpush1.bf16.msra.mxu1 %v2246_v44  ;;  %v1274_v44 = vrot.slane %v1269_v40, %v2594_v9 }
 0x258   :  { %1499 = vmatprep.subr.bf16.mxu1 %v2251_v45  ;;  %v1278_v45 = vrot.slane %v1269_v40, %v2596_v10 }
 0x25b   :  { %1500 = vmatpush1.bf16.msra.mxu1 %v2249_v46 }
 0x25c   :  { %1501 = vmatprep.subr.bf16.mxu1 %v2254_v47 }
 0x25f   :  { %1502 = vmatpush1.bf16.msra.mxu1 %v2252_v48 }
 0x260   :  { %1503 = vmatprep.subr.bf16.mxu1 %v2257_v49 }
 0x263   :  { %1504 = vmatpush1.bf16.msra.mxu1 %v2255_v50 }
 0x264   :  { %1505 = vmatprep.subr.bf16.mxu1 %v2260_v51 }
 0x267   :  { %1506 = vmatpush1.bf16.msra.mxu1 %v2258_v52 }
 0x268   :  { %1507 = vmatprep.subr.bf16.mxu1 %v2263_v53 }
 0x26b   :  { %1508 = vmatpush1.bf16.msra.mxu1 %v2261_v54  ;;  %v2267_v54 = vld [vmem:[#allocation10 + $0x40] sm:$0xff]  }
 0x26c   :  { %1509 = vmatprep.subr.bf16.mxu1 %v2266_v55  ;;  %v2268_v55 = vld [vmem:[#allocation10] sm:$0xff]  }
 0x26f   :  { %1510 = vmatpush1.bf16.msra.mxu1 %v2264_v56  ;;  %v2269_v56 = vld [vmem:[#allocation10 + $0x48] sm:$0xff]  }
 0x270   :  { %1980 = vmatprep.subr.bf16.mxu1 %v2267_v54 }
 0x305   :  { %v1193_v57 = vpop.f32.mrb[4].mxu1 }
 0x306   :  { %v1200_v58 = vrot.slane %v1193_v57, 4  ;;  %v1195_v59 = vpop.f32.mrb[5].mxu1 }
 0x307   :  { %v1206_v60 = vrot.slane %v1195_v59, 4  ;;  %v1197_v61 = vpop.f32.mrb[6].mxu1 }
 0x308   :  { %v1201_v62 = vadd.f32 %v1200_v58, %v1193_v57  ;;  %v1198_v63 = vpop.f32.mrb[7].mxu1  ;;  %v2271_v58 = vld [vmem:[#allocation10 + $0x50] sm:$0xff]   ;;  %v2274_v61 = vld [vmem:[#allocation10 + $0x18] sm:$0xff]  }
 0x309   :  { %v1207_v0 = vadd.f32 %v1206_v60, %v1195_v59  ;;  %v2273_v60 = vld [vmem:[#allocation10 + $0x58] sm:$0xff]   ;;  %v2276_v63 = vld [vmem:[#allocation10 + $0x20] sm:$0xff]  }
 0x30a   :  { %v1202_v1 = vrot.slane %v1201_v62, 2 }
 0x30b   :  { %v1208_v2 = vrot.slane %v1207_v0, 2 }
 0x30c   :  { %v1203_v4 = vadd.f32 %v1202_v1, %v1201_v62  ;;  %v2275_v62 = vld [vmem:[#allocation10 + $0x60] sm:$0xff]   ;;  %v2278_v1 = vld [vmem:[#allocation10 + $0x28] sm:$0xff]  }
 0x30d   :  { %v1209_v5 = vadd.f32 %v1208_v2, %v1207_v0  ;;  %v2277_v0 = vld [vmem:[#allocation10 + $0x68] sm:$0xff]   ;;  %v2279_v2 = vld [vmem:[#allocation10 + $0x70] sm:$0xff]  }
 0x30e   :  { %v1204_v6 = vrot.slane %v1203_v4, 1 }
 0x30f   :  { %v1210_v7 = vrot.slane %v1209_v5, 1 }
 0x310   :  { %v1205_v8 = vadd.f32 %v1204_v6, %v1203_v4  ;;  %v2280_v4 = vld [vmem:[#allocation10 + $0x30] sm:$0xff]   ;;  %v2282_v6 = vld [vmem:[#allocation10 + $0x38] sm:$0xff]  }
 0x311   :  { %v1211_v11 = vadd.f32 %v1210_v7, %v1209_v5  ;;  %v2281_v5 = vld [vmem:[#allocation10 + $0x78] sm:$0xff]  }
 0x312   :  { %v1212_v12 = vmul.f32 0.125, %v1205_v8 }
 0x313   :  { %v1213_v13 = vmul.f32 0.125, %v1211_v11 }
 0x314   :  { %v1214_v14 = vsub.f32 %v1193_v57, %v1212_v12  ;;  %v2270_v57 = vld [vmem:[#allocation10 + $0x8] sm:$0xff]  }
 0x315   :  { %v1215_v15 = vsub.f32 %v1195_v59, %v1213_v13  ;;  %v2272_v59 = vld [vmem:[#allocation10 + $0x10] sm:$0xff]  }
 0x316   :  { %v1216_v16 = vmul.f32 %v1214_v14, %v1214_v14 }
 0x317   :  { %v1217_v17 = vmul.f32 %v1215_v15, %v1215_v15 }
 0x318   :  { %v1218_v18 = vrot.slane %v1216_v16, 4 }
 0x319   :  { %v1224_v19 = vrot.slane %v1217_v17, 4 }
 0x31a   :  { %v1219_v20 = vadd.f32 %v1218_v18, %v1216_v16 }
 0x31b   :  { %v1225_v21 = vadd.f32 %v1224_v19, %v1217_v17 }
 0x31c   :  { %v1220_v22 = vrot.slane %v1219_v20, 2 }
 0x31d   :  { %v1226_v23 = vrot.slane %v1225_v21, 2 }
 0x31e   :  { %v1221_v24 = vadd.f32 %v1220_v22, %v1219_v20 }
 0x31f   :  { %v1227_v25 = vadd.f32 %v1226_v23, %v1225_v21 }
 0x320   :  { %v1222_v26 = vrot.slane %v1221_v24, 1 }
 0x321   :  { %v1228_v27 = vrot.slane %v1227_v25, 1 }
 0x322   :  { %v1223_v28 = vadd.f32 %v1222_v26, %v1221_v24 }
 0x323   :  { %v1229_v29 = vadd.f32 %v1228_v27, %v1227_v25 }
 0x324   :  { %v1230_v30 = vmul.f32 0.125, %v1223_v28 }
 0x325   :  { %v1231_v31 = vmul.f32 0.125, %v1229_v29 }
 0x326   :  { %v1233_v32 = vadd.f32 1e-05, %v1230_v30 }
 0x327   :  { %v1234_v33 = vadd.f32 1e-05, %v1231_v31 }
 0x328   :  { %2287 = vrsqrt.f32 %v1233_v32 }
 0x329   :  { %2289 = vrsqrt.f32 %v1234_v33 }
 0x332   :  { %v2288_v34 = vpop.eup %2287 }
 0x333   :  { %v2290_v35 = vpop.eup %2289 }
 0x334   :  { %v1239_v36 = vcombine.low %v2288_v34, %v2290_v35 }
 0x336   :  { %v1246_v37 = vrot.slane %v1239_v36, %v2587_v3 }
 0x338   :  { %v1253_v39 = vrot.slane %v1246_v37, %v2587_v3 }
 0x33a   :  { %v1255_v41 = vmul.f32 %v1253_v39, %v1232_v38 }
 0x33c   :  { %v1260_v42 = vrot.slane %v1255_v41, %v2594_v9  ;;  %v1264_v43 = vrot.slane %v1255_v41, %v2596_v10 }
 0x33e   :  { %v1268_v46 = vmul.f32 %v1264_v43, %v1215_v15  ;;  %v1267_v47 = vmul.f32 %v1260_v42, %v1214_v14 }
 0x340   :  { %v1282_v48 = vadd.f32 %v1278_v45, %v1268_v46  ;;  %v1281_v49 = vadd.f32 %v1274_v44, %v1267_v47 }
 0x342   :  { %v1284_v50 = vmax.f32 %v1282_v48, 0.0  ;;  %v1283_v51 = vmax.f32 %v1281_v49, 0.0 }
 0x344   :  { %v1286_v52 = vpack.c.bf16 %v1284_v50, %v1284_v50  ;;  %v1285_v53 = vpack.c.bf16 %v1283_v51, %v1283_v51  ;;  %v1552_v51 = vld [vmem:[%s2652_s8] sm:$0x3] }
 0x346   :  { %1511 = vmatprep.mubr.bf16.mxu1 %v1286_v52 }
 0x347   :  { %1512 = vmatmul.mubr.bf16.vlgmr.msra.gmra.mrb[8].mxu1 %v1285_v53  ;;  %v1589_v53 = vld [vmem:[%s2653_s9] sm:$0x3] }
 0x348   :  { %1981 = vmatpush3.bf16.msra.mxu1 %v2268_v55 }
 0x349   :  { %1982 = vmatprep.subr.bf16.mxu1 %v2269_v56 }
 0x34c   :  { %1983 = vmatpush3.bf16.msra.mxu1 %v2270_v57  ;;  %v1594_v57 = vrot.slane %v1589_v53, %v2594_v9 }
 0x34d   :  { %1984 = vmatprep.subr.bf16.mxu1 %v2271_v58  ;;  %v1598_v58 = vrot.slane %v1589_v53, %v2596_v10 }
 0x350   :  { %1985 = vmatpush3.bf16.msra.mxu1 %v2272_v59 }
 0x351   :  { %1986 = vmatprep.subr.bf16.mxu1 %v2273_v60 }
 0x354   :  { %1987 = vmatpush3.bf16.msra.mxu1 %v2274_v61 }
 0x355   :  { %1988 = vmatprep.subr.bf16.mxu1 %v2275_v62 }
 0x358   :  { %1989 = vmatpush3.bf16.msra.mxu1 %v2276_v63 }
 0x359   :  { %1990 = vmatprep.subr.bf16.mxu1 %v2277_v0 }
 0x35c   :  { %1991 = vmatpush3.bf16.msra.mxu1 %v2278_v1 }
 0x35d   :  { %1992 = vmatprep.subr.bf16.mxu1 %v2279_v2 }
 0x360   :  { %1993 = vmatpush3.bf16.msra.mxu1 %v2280_v4  ;;  %v1963_v4 = vld [vmem:[%s2655_s11] ss:$0 sm:$0xff] }
 0x361   :  { %1994 = vmatprep.subr.bf16.mxu1 %v2281_v5 }
 0x364   :  { %1995 = vmatpush3.bf16.msra.mxu1 %v2282_v6 }
 0x41a   :  { %v1513_v7 = vpop.f32.mrb[8].mxu1 }
 0x41b   :  { %v1520_v8 = vrot.slane %v1513_v7, 4  ;;  %v1515_v11 = vpop.f32.mrb[9].mxu1 }
 0x41c   :  { %v1526_v12 = vrot.slane %v1515_v11, 4  ;;  %v1517_v13 = vpop.f32.mrb[10].mxu1 }
 0x41d   :  { %v1521_v14 = vadd.f32 %v1520_v8, %v1513_v7  ;;  %v1518_v15 = vpop.f32.mrb[11].mxu1 }
 0x41e   :  { %v1527_v16 = vadd.f32 %v1526_v12, %v1515_v11 }
 0x41f   :  { %v1522_v17 = vrot.slane %v1521_v14, 2 }
 0x420   :  { %v1528_v18 = vrot.slane %v1527_v16, 2 }
 0x421   :  { %v1523_v19 = vadd.f32 %v1522_v17, %v1521_v14 }
 0x422   :  { %v1529_v20 = vadd.f32 %v1528_v18, %v1527_v16 }
 0x423   :  { %v1524_v21 = vrot.slane %v1523_v19, 1 }
 0x424   :  { %v1530_v22 = vrot.slane %v1529_v20, 1 }
 0x425   :  { %v1525_v23 = vadd.f32 %v1524_v21, %v1523_v19 }
 0x426   :  { %v1531_v24 = vadd.f32 %v1530_v22, %v1529_v20 }
 0x427   :  { %v1532_v25 = vmul.f32 0.125, %v1525_v23 }
 0x428   :  { %v1533_v26 = vmul.f32 0.125, %v1531_v24 }
 0x429   :  { %v1534_v27 = vsub.f32 %v1513_v7, %v1532_v25 }
 0x42a   :  { %v1535_v28 = vsub.f32 %v1515_v11, %v1533_v26 }
 0x42b   :  { %v1536_v29 = vmul.f32 %v1534_v27, %v1534_v27 }
 0x42c   :  { %v1537_v30 = vmul.f32 %v1535_v28, %v1535_v28 }
 0x42d   :  { %v1538_v31 = vrot.slane %v1536_v29, 4 }
 0x42e   :  { %v1544_v32 = vrot.slane %v1537_v30, 4 }
 0x42f   :  { %v1539_v33 = vadd.f32 %v1538_v31, %v1536_v29 }
 0x430   :  { %v1545_v34 = vadd.f32 %v1544_v32, %v1537_v30 }
 0x431   :  { %v1540_v35 = vrot.slane %v1539_v33, 2 }
 0x432   :  { %v1546_v36 = vrot.slane %v1545_v34, 2 }
 0x433   :  { %v1541_v37 = vadd.f32 %v1540_v35, %v1539_v33 }
 0x434   :  { %v1547_v38 = vadd.f32 %v1546_v36, %v1545_v34 }
 0x435   :  { %v1542_v39 = vrot.slane %v1541_v37, 1 }
 0x436   :  { %v1548_v40 = vrot.slane %v1547_v38, 1 }
 0x437   :  { %v1543_v41 = vadd.f32 %v1542_v39, %v1541_v37 }
 0x438   :  { %v1549_v42 = vadd.f32 %v1548_v40, %v1547_v38 }
 0x439   :  { %v1550_v43 = vmul.f32 0.125, %v1543_v41 }
 0x43a   :  { %v1551_v44 = vmul.f32 0.125, %v1549_v42 }
 0x43b   :  { %v1553_v45 = vadd.f32 1e-05, %v1550_v43 }
 0x43c   :  { %v1554_v46 = vadd.f32 1e-05, %v1551_v44 }
 0x43d   :  { %2291 = vrsqrt.f32 %v1553_v45 }
 0x43e   :  { %2293 = vrsqrt.f32 %v1554_v46 }
 0x447   :  { %v2292_v47 = vpop.eup %2291 }
 0x448   :  { %v2294_v48 = vpop.eup %2293 }
 0x449   :  { %v1559_v49 = vcombine.low %v2292_v47, %v2294_v48 }
 0x44b   :  { %v1566_v50 = vrot.slane %v1559_v49, %v2587_v3 }
 0x44d   :  { %v1573_v52 = vrot.slane %v1566_v50, %v2587_v3 }
 0x44f   :  { %v1575_v54 = vmul.f32 %v1573_v52, %v1552_v51 }
 0x451   :  { %v1580_v55 = vrot.slane %v1575_v54, %v2594_v9  ;;  %v1584_v56 = vrot.slane %v1575_v54, %v2596_v10 }
 0x453   :  { %v1588_v59 = vmul.f32 %v1584_v56, %v1535_v28  ;;  %v1587_v60 = vmul.f32 %v1580_v55, %v1534_v27 }
 0x455   :  { %v1602_v61 = vadd.f32 %v1598_v58, %v1588_v59  ;;  %v1601_v62 = vadd.f32 %v1594_v57, %v1587_v60 }
 0x457   :  { %v1604_v63 = vmax.f32 %v1602_v61, 0.0  ;;  %v1603_v0 = vmax.f32 %v1601_v62, 0.0 }
 0x459   :  { %v1606_v3 = vpack.c.bf16 %v1604_v63, %v1604_v63  ;;  %v1605_v1 = vpack.c.bf16 %v1603_v0, %v1603_v0 }
 0x45b   :  { %1774 = vmatprep.mubr.bf16.mxu1 %v1606_v3 }
 0x45c   :  { %1775 = vmatmul.mubr.bf16.vlgmr.msra.gmra.mrb[12].mxu1 %v1605_v1 }
 0x52f   :  { %v1996_v2 = vpop.f32.mrb[12].mxu1 }
 0x530   :  { %v1997_v5 = vpop.f32.mrb[13].mxu1 }
 0x531   :  { %v1998_v9 = vadd.f32 %v1997_v5, %v1996_v2  ;;  %v1999_v10 = vpop.f32.mrb[14].mxu1 }
 0x532   :  { %v2000_v6 = vpop.f32.mrb[15].mxu1 }
 0x533   :  { %v1777_v7 = vadd.f32 %v1998_v9, %v1963_v4 }
 0x535   :  { %1782 = vst [vmem:[#allocation11] sm:$0xff] %v1777_v7 }
 0x536   :  { %2416 = shalt.err (!%p2413_p2)
}
 0x537   :  { %s2417_s11 = scalar_lea.hbm %s2656_s12, 128 }
 0x538   :  { %p2418_p3 = scmp.ne.s32.totalorder %s2656_s12, %s2417_s11  ;;  %p2421_p4 = scmp.lt.u32.totalorder %s2417_s11, %s2656_s12 }
 0x53a   :  { %p2423_p5 = pnand %p2421_p4, %p2418_p3 }
 0x53c   :  { %2426 = shalt.err (!%p2423_p5)
}
 0x53d   :  { %1792 = dma.vmem_to_hbm [thread:$0]  %s1790_s20, 128, %s2656_s12, [#allocation4]  }
 0x53e   :  { %2433 = dma.done.wait [#allocation4], 128  }
 0x53f   :  { %2434 = vsyncadd [#allocation4], 4294967168 }
 0x540   :  { %1796 = vsyncpa [#allocation3], 1 }
 0x541   :  { %1797 = vsyncpa [#allocation6], 1 }
 0x542   :  { %1798 = vsyncpa [#allocation9], 1 }
 0x543   :  { %1799 = vsyncpa [#allocation4], 1 }

</bundles_post_ra>
